<compile_context>
chip_gen: v6e
topology: v6e:2x2x1
jax: 0.10.0
libtpu: 0.0.40
codegen_flags: <defaults>
</compile_context>

<pallas_src>
import functools

import jax
import jax.numpy as jnp
from jax import lax
from jax.experimental import pallas as pl
from jax.experimental.pallas import tpu as pltpu

LANES = 128      # vreg lane width
SUBLANES = 8     # vreg sublane count
NUM_CORES = 2    # TensorCores per chip on v7x; extra axis is harmless on v5e/v6e


# ---------------------------------------------------------------------------
# Pallas kernel: fused Charbonnier elementwise + partial-sum reduction
# ---------------------------------------------------------------------------
def _charbonnier_kernel(x_ref, y_ref, o_ref, *, eps2, block_rows, num_blocks,
                        steps_per_core, tail_rows):
    c = pl.program_id(0)             # core axis ("parallel")
    i = pl.program_id(1)             # reduction axis ("arbitrary")
    blk = c * steps_per_core + i     # global block index (may exceed num_blocks)

    @pl.when(i == 0)
    def _():
        o_ref[...] = jnp.zeros_like(o_ref)

    d = x_ref[...].astype(jnp.float32) - y_ref[...].astype(jnp.float32)
    v = jnp.sqrt(d * d + eps2)       # sqrt runs on the EUP slot (cheap)

    def accumulate(vals):
        # vreg-shaped partial sums: (block_rows,128) -> (block_rows/8,8,128) is
        # a pure re-tiling; the axis-0 sum is plain VPU adds (no XLU reduce,
        # no masked (1,1) store) every step.
        o_ref[0] += vals.reshape(block_rows // SUBLANES, SUBLANES, LANES).sum(axis=0)

    full_blocks = num_blocks - 1 if tail_rows else num_blocks

    @pl.when(blk < full_blocks)      # fully in-bounds blocks: no mask at all
    def _():
        accumulate(v)

    if tail_rows:                    # static: only emitted when rows is ragged
        @pl.when(blk == num_blocks - 1)
        def _():
            row = lax.broadcasted_iota(jnp.int32, (block_rows, LANES), 0)
            accumulate(jnp.where(row < tail_rows, v, 0.0))


# ---------------------------------------------------------------------------
# Wrapper
# ---------------------------------------------------------------------------
def charbonnier_loss(pred, target, epsilon=0.001, block_rows=4096):
    """mean(sqrt((pred - target)^2 + eps^2)), single-pass Pallas TPU kernel."""
    assert pred.shape == target.shape
    n = pred.size
    eps = abs(float(epsilon))

    x = pred.reshape(-1)
    y = target.reshape(-1)

    rows = pl.cdiv(n, LANES)
    lane_pad = rows * LANES - n
    if lane_pad:
        # Only when n is not a multiple of 128: pad to the next lane boundary
        # so the (rows, 128) view exists.  Padded elements each contribute
        # exactly sqrt(eps^2) = eps to the sum; corrected analytically below.
        x = jnp.pad(x, (0, lane_pad))
        y = jnp.pad(y, (0, lane_pad))
    x2 = x.reshape(rows, LANES)
    y2 = y.reshape(rows, LANES)

    # Big tiles amortize per-grid-step pipeline overhead; keep a multiple of 16
    # rows so bf16 inputs also tile cleanly; shrink for tiny inputs.
    block_rows = max(SUBLANES, min(block_rows, pl.cdiv(rows, SUBLANES) * SUBLANES))
    num_blocks = pl.cdiv(rows, block_rows)
    tail_rows = rows % block_rows             # 0 -> no ragged last block
    steps_per_core = pl.cdiv(num_blocks, NUM_CORES)

    def in_index_map(c, i):
        # Clamp so the (at most one) overhanging step per core re-reads the
        # last block instead of issuing an out-of-bounds DMA; its contribution
        # is skipped inside the kernel via the blk guards.
        return (jnp.minimum(c * steps_per_core + i, num_blocks - 1), 0)

    kernel = functools.partial(
        _charbonnier_kernel,
        eps2=eps * eps,
        block_rows=block_rows,
        num_blocks=num_blocks,
        steps_per_core=steps_per_core,
        tail_rows=tail_rows,
    )

    partials = pl.pallas_call(
        kernel,
        out_shape=jax.ShapeDtypeStruct((NUM_CORES, SUBLANES, LANES), jnp.float32),
        grid=(NUM_CORES, steps_per_core),
        in_specs=[
            pl.BlockSpec((block_rows, LANES), in_index_map),
            pl.BlockSpec((block_rows, LANES), in_index_map),
        ],
        out_specs=pl.BlockSpec((1, SUBLANES, LANES), lambda c, i: (c, 0, 0)),
        compiler_params=pltpu.CompilerParams(
            dimension_semantics=("parallel", "arbitrary"),
            vmem_limit_bytes=32 * 1024 * 1024,
        ),
    )(x2, y2)

    # Tiny final reduce (2*8*128 f32), analytic pad correction, then the mean.
    total = jnp.sum(partials) - lane_pad * eps
    return total / n


# ---------------------------------------------------------------------------
if __name__ == "__main__":
    key = jax.random.PRNGKey(0)
    k1, k2, k3, k4 = jax.random.split(key, 4)
    eps = 0.001
    loss_fn = jax.jit(functools.partial(charbonnier_loss, epsilon=eps))

    # Small NCHW-style image batch (lane-aligned path).
    shape = (2, 4, 16, 16)
    pred = jax.random.normal(k1, shape, jnp.float32)
    target = jax.random.normal(k2, shape, jnp.float32)
    loss = loss_fn(pred, target)
    jax.block_until_ready(loss)
    d = pred - target
    ref = jnp.mean(jnp.sqrt(d * d + eps * eps))
    assert loss.shape == () and jnp.isfinite(loss)
    assert jnp.allclose(loss, ref, rtol=1e-5, atol=1e-6), (loss, ref)

    # Odd-sized input: exercises the lane-pad correction + ragged-block mask.
    shape2 = (3, 5, 7)
    p2 = jax.random.normal(k3, shape2, jnp.float32)
    t2 = jax.random.normal(k4, shape2, jnp.float32)
    loss2 = loss_fn(p2, t2)
    jax.block_until_ready(loss2)
    d2 = p2 - t2
    ref2 = jnp.mean(jnp.sqrt(d2 * d2 + eps * eps))
    assert jnp.allclose(loss2, ref2, rtol=1e-5, atol=1e-6), (loss2, ref2)

    print("KERNEL_OK")
</pallas_src>

<mosaic_0001>
module attributes {stable_mosaic.version = 11 : i64} {
  func.func @_charbonnier_kernel(%arg0: i32, %arg1: i32, %arg2: memref<16x128xf32, #tpu.memory_space<vmem>>, %arg3: memref<16x128xf32, #tpu.memory_space<vmem>>, %arg4: memref<1x8x128xf32, #tpu.memory_space<vmem>>) attributes {dimension_semantics = [#tpu.dimension_semantics<parallel>, #tpu.dimension_semantics<arbitrary>], iteration_bounds = array<i64: 2, 1>, scalar_prefetch = 0 : i64, scratch_operands = 0 : i64, tpu.core_type = #tpu.core_type<tc>, window_params = [{transform_indices = @transform_0, window_bounds = array<i64: 16, 128>}, {transform_indices = @transform_1, window_bounds = array<i64: 16, 128>}, {transform_indices = @transform_2, window_bounds = array<i64: 1, 8, 128>}]} {
    %c1_i32 = arith.constant 1 : i32
    %0 = arith.muli %arg0, %c1_i32 : i32
    %1 = arith.addi %0, %arg1 : i32
    %c0_i32 = arith.constant 0 : i32
    %2 = arith.cmpi eq, %arg1, %c0_i32 : i32
    %3 = arith.extui %2 : i1 to i32
    %c0_i32_0 = arith.constant 0 : i32
    %4 = arith.cmpi ne, %3, %c0_i32_0 : i32
    scf.if %4 {
      %cst_6 = arith.constant 0.000000e+00 : f32
      %15 = vector.broadcast %cst_6 : f32 to vector<1x8x128xf32>
      %c0_7 = arith.constant 0 : index
      %c0_8 = arith.constant 0 : index
      %c0_9 = arith.constant 0 : index
      %16 = vector.load %arg4[%c0_7, %c0_8, %c0_9] : memref<1x8x128xf32, #tpu.memory_space<vmem>>, vector<1x8x128xf32>
      tpu.vector_store %arg4[%c0_7, %c0_8, %c0_9], %15 {strides = array<i32>} : memref<1x8x128xf32, #tpu.memory_space<vmem>>, vector<1x8x128xf32>,
    } else {
    }
    %c0 = arith.constant 0 : index
    %c0_1 = arith.constant 0 : index
    %5 = vector.load %arg2[%c0, %c0_1] : memref<16x128xf32, #tpu.memory_space<vmem>>, vector<16x128xf32>
    %c0_2 = arith.constant 0 : index
    %c0_3 = arith.constant 0 : index
    %6 = vector.load %arg3[%c0_2, %c0_3] : memref<16x128xf32, #tpu.memory_space<vmem>>, vector<16x128xf32>
    %7 = arith.subf %5, %6 : vector<16x128xf32>
    %8 = arith.mulf %7, %7 : vector<16x128xf32>
    %cst = arith.constant 9.99999997E-7 : f32
    %9 = vector.broadcast %cst : f32 to vector<16x128xf32>
    %10 = arith.addf %8, %9 : vector<16x128xf32>
    %11 = math.sqrt %10 : vector<16x128xf32>
    %c1_i32_4 = arith.constant 1 : i32
    %12 = arith.cmpi slt, %1, %c1_i32_4 : i32
    %13 = arith.extui %12 : i1 to i32
    %c0_i32_5 = arith.constant 0 : i32
    %14 = arith.cmpi ne, %13, %c0_i32_5 : i32
    scf.if %14 {
      %c0_6 = arith.constant 0 : index
      %c0_7 = arith.constant 0 : index
      %c0_8 = arith.constant 0 : index
      %15 = vector.load %arg4[%c0_6, %c0_7, %c0_8] : memref<1x8x128xf32, #tpu.memory_space<vmem>>, vector<1x8x128xf32>
      %16 = vector.shape_cast %15 : vector<1x8x128xf32> to vector<8x128xf32>
      %17 = vector.shape_cast %11 : vector<16x128xf32> to vector<2x8x128xf32>
      %cst_9 = arith.constant dense<0.000000e+00> : vector<8x128xf32>
      %18 = vector.multi_reduction <add>, %17, %cst_9 [0] : vector<2x8x128xf32> to vector<8x128xf32>
      %19 = arith.addf %16, %18 : vector<8x128xf32>
      %c0_10 = arith.constant 0 : index
      %c0_11 = arith.constant 0 : index
      %c0_12 = arith.constant 0 : index
      %20 = vector.load %arg4[%c0_10, %c0_11, %c0_12] : memref<1x8x128xf32, #tpu.memory_space<vmem>>, vector<1x8x128xf32>
      %21 = vector.shape_cast %20 : vector<1x8x128xf32> to vector<8x128xf32>
      %22 = vector.shape_cast %19 : vector<8x128xf32> to vector<1x8x128xf32>
      tpu.vector_store %arg4[%c0_10, %c0_11, %c0_12], %22 {strides = array<i32>} : memref<1x8x128xf32, #tpu.memory_space<vmem>>, vector<1x8x128xf32>,
    } else {
    }
    return
  }
  func.func @transform_0(%arg0: i32, %arg1: i32) -> (i32, i32) {
    %c1_i32 = arith.constant 1 : i32
    %0 = arith.muli %arg0, %c1_i32 : i32
    %1 = arith.addi %0, %arg1 : i32
    %c0_i32 = arith.constant 0 : i32
    %2 = arith.minsi %1, %c0_i32 : i32
    %c0_i32_0 = arith.constant 0 : i32
    %c0_i32_1 = arith.constant 0 : i32
    return %2, %c0_i32_0 : i32, i32
  }
  func.func @transform_1(%arg0: i32, %arg1: i32) -> (i32, i32) {
    %c1_i32 = arith.constant 1 : i32
    %0 = arith.muli %arg0, %c1_i32 : i32
    %1 = arith.addi %0, %arg1 : i32
    %c0_i32 = arith.constant 0 : i32
    %2 = arith.minsi %1, %c0_i32 : i32
    %c0_i32_0 = arith.constant 0 : i32
    %c0_i32_1 = arith.constant 0 : i32
    return %2, %c0_i32_0 : i32, i32
  }
  func.func @transform_2(%arg0: i32, %arg1: i32) -> (i32, i32, i32) {
    %c0_i32 = arith.constant 0 : i32
    %c0_i32_0 = arith.constant 0 : i32
    %c0_i32_1 = arith.constant 0 : i32
    return %arg0, %c0_i32, %c0_i32_0 : i32, i32, i32
  }
}

</mosaic_0001>

<bundles_post_ra>
// kernel: charbonnier_loss.1
= control target key start
LH: loop header
LB: loop body
LE: loop exit
PB: predicated region body
PF: predicated region fallthrough
CT: control target
= control target key end

     0   :  { %s413_s9 = smov 0   ;;  %s415_s10 = smov 0   ;;  %s461_s0 = inlined_call_operand.vmem [shape: f32[16,128], index: 0, kind: input, shape index: {}]   ;;  %s462_s1 = inlined_call_operand.vmem [shape: f32[16,128], index: 1, kind: input, shape index: {}]   ;;  %s463_s2 = inlined_call_operand.vmem [shape: f32[2,8,128], index: 2, kind: output, shape index: {}]  }
   0x1   :  { %s417_s11 = smov 0  }
   0x2 LB: > { %s24_s12 = sadd.s32 1, %s391_s10  ;;  %p335_p0 = scmp.ge.s32.totalorder %s395_s11, 1  ;;  %s395_s11 = sphi %s417_s11, %s12_s11   ;;  %s391_s10 = sphi %s415_s10, %s465_s10   ;;  %s387_s9 = sphi %s413_s9, %s464_s9  }
   0x3   : > { %p26_p1 = scmp.ge.s32.totalorder %s24_s12, 2  ;;  %p160_p2 = scmp.lt.s32.totalorder %s395_s11, 3 }
   0x5   : > { %s467_s12 = smov (%p26_p1, %s24_s12), 0  ;;  %p161_p3 = pnand %p335_p0, %p160_p2 }
   0x6   : > { %p193_p4 = scmp.lt.s32.totalorder (!%p161_p3), %s387_s9, 0  ;;  %p216_p5 = scmp.lt.s32.totalorder (!%p161_p3), %s387_s9, 1 }
   0x7   : > { %164 = sbr.rel (%p161_p3) target bundleno = 52 (0x34), region = 28  ;;  %p341_p7 = scmp.ge.s32.totalorder (!%p161_p3), %s387_s9, 1 }
   0xc   : > { %s194_s13 = scalar_select %p193_p4, %s387_s9, 0  ;;  %v397_v0 = vmov 0.0  }
   0xd   : > { %s217_s14 = scalar_select %p216_p5, %s387_s9, 1 }
   0xe   : > { %s336_s15 = sshll.u32 %s194_s13, 1 }
   0xf   : > { %p196_p6 = scmp.lt.s32.totalorder %s336_s15, 1  ;;  %s340_s16 = sshll.u32 %s217_s14, 3 }
  0x10   : > { %s440_s19 = scalar_lea.vmem %s463_s2, %s340_s16 }
  0x11   : > { %s469_s15 = smov (!%p196_p6, %s336_s15), 1  ;;  %225 = vst [vmem:[%s440_s19] sm:$0xff] %v397_v0 }
  0x12   : > { %s337_s20 = sshll.u32 %s469_s15, 3 }
  0x13   : > { %s199_s23 = scalar_lea.vmem %s461_s0, %s337_s20  ;;  %s211_s26 = scalar_lea.vmem %s462_s1, %s337_s20 }
  0x14   : > { %v226_v1 = vld [vmem:[%s199_s23] sm:$0xff]  ;;  %v227_v2 = vld [vmem:[%s199_s23 + $0x8] sm:$0xff] }
  0x15   : > { %v228_v3 = vld [vmem:[%s211_s26] sm:$0xff]  ;;  %v229_v4 = vld [vmem:[%s211_s26 + $0x8] sm:$0xff] }
  0x16   : > { %v230_v5 = vsub.f32 %v226_v1, %v228_v3  ;;  %v231_v6 = vsub.f32 %v227_v2, %v229_v4 }
  0x18   : > { %v232_v7 = vmul.f32 %v230_v5, %v230_v5  ;;  %v233_v8 = vmul.f32 %v231_v6, %v231_v6 }
  0x1a   : > { %v234_v9 = vadd.f32 1e-06, %v232_v7  ;;  %v235_v10 = vadd.f32 1e-06, %v233_v8 }
  0x1c   : > { %369 = vrsqrt.f32 %v234_v9  ;;  %vm238_vm0 = vcmp.eq.f32.partialorder %v234_v9, inf  ;;  %v241_v12 = vand.u32 2147483648, %v234_v9  ;;  %vm240_vm1 = vcmp.eq.f32.partialorder %v234_v9, 0.0 }
  0x1d   : > { %371 = vrsqrt.f32 %v235_v10  ;;  %vm245_vm2 = vcmp.eq.f32.partialorder %v235_v10, inf  ;;  %v248_v15 = vand.u32 2147483648, %v235_v10  ;;  %vm247_vm3 = vcmp.eq.f32.partialorder %v235_v10, 0.0 }
  0x29   : > { %v370_v11 = vpop.eup %369 }
  0x2a   : > { %v372_v13 = vpop.eup %371  ;;  %v237_v14 = vmul.f32 %v370_v11, %v234_v9  ;;  %253 = sbr.rel (%p341_p7) target bundleno = 52 (0x34), region = 36 }
  0x2b   : > { %v244_v16 = vmul.f32 %v372_v13, %v235_v10 }
  0x2c   : > { %v239_v17 = vsel %vm238_vm0, %v234_v9, %v237_v14 }
  0x2d   : > { %v242_v18 = vsel %vm240_vm1, %v241_v12, %v239_v17  ;;  %v246_v19 = vsel %vm245_vm2, %v235_v10, %v244_v16 }
  0x2e   : > { %v249_v20 = vsel %vm247_vm3, %v248_v15, %v246_v19 }
  0x2f   : > { %v254_v21 = vld [vmem:[%s440_s19] sm:$0xff]  ;;  %v255_v22 = vadd.f32 %v249_v20, %v242_v18 }
  0x31   : > { %v256_v23 = vadd.f32 %v255_v22, %v254_v21 }
  0x33   : > { %257 = vst [vmem:[%s440_s19] sm:$0xff] %v256_v23 }
  0x34 PF: > { %s12_s11 = sadd.s32 1, %s395_s11   ;;  %s464_s9 = smov %s391_s10 }
  0x35   : > { %p9_p8 = scmp.ge.s32.totalorder %s12_s11, 4   ;;  %s465_s10 = smov %s467_s12 }
  0x37   :  { %11 = sbr.rel (!%p9_p8) target bundleno = 2 (0x2), region = 69 }

</bundles_post_ra>
